<compile_context>
chip_gen: v7x
topology: tpu7x:2x2x1
jax: 0.10.0
libtpu: 0.0.40
codegen_flags: <defaults>
</compile_context>

<pallas_src>
import math

import jax
import jax.numpy as jnp
from jax.experimental import pallas as pl
from jax.experimental.pallas import tpu as pltpu


def _round_up(x, m):
    return (x + m - 1) // m * m


def _pick_node_tile(n_pad, max_tile):
    """Largest multiple of 128 that divides n_pad and is <= max_tile (>=128)."""
    best = 128
    t = 128
    cap = min(max_tile, n_pad)
    while t <= cap:
        if n_pad % t == 0:
            best = t
        t += 128
    return best


def _working_set_bytes(tm, tk, tn, op_bytes):
    return (2 * tm * tk * op_bytes      # adjacency tile (double-buffered)
            + 2 * tk * tn * op_bytes    # feature tile   (double-buffered)
            + 2 * tm * tn * 4           # f32 output tile (double-buffered)
            + 2 * tm * 4)               # norm tile


def _regin_kernel(adj_ref, feat_ref, norm_ref, out_ref):
    """One (i, j, k) grid step of   out = (A @ feat) * norm   (norm precomputed)."""
    k = pl.program_id(2)

    @pl.when(k == 0)
    def _init():
        out_ref[...] = jnp.zeros_like(out_ref)

    # Weighted neighbor aggregation (fn.u_mul_e + fn.sum): MXU matmul, f32 accumulate
    # directly into the resident f32 output block (reduction axis k is last).
    out_ref[...] += jnp.dot(adj_ref[...], feat_ref[...],
                            preferred_element_type=jnp.float32)

    @pl.when(k == pl.num_programs(2) - 1)
    def _finalize():
        out_ref[...] = out_ref[...] * norm_ref[...]


def regin_conv(src, dst, e_feat, feat, edge_weight, alpha,
               *, operand_dtype=jnp.bfloat16,
               tile_m=1024, tile_k=512, tile_feat=None):
    """REGINConv forward.

    src, dst    : int32 [E]     edge endpoints (message flows src -> dst)
    e_feat      : int32 [E]     1-based edge-type ids
    feat        : f32   [N, D]  node features
    edge_weight : f32   [T, 1]  learnable per-type weight
    alpha       : float         scaling factor
    """
    n, d = feat.shape
    out_dtype = feat.dtype
    op_bytes = jnp.dtype(operand_dtype).itemsize

    # --- tile plan -------------------------------------------------------------
    n_pad = _round_up(n, 128)
    # Keep >= 2 dst-row blocks whenever possible so both v7x TensorCores get work.
    tm_cap = min(tile_m, max(128, n_pad // 2)) if n_pad >= 256 else tile_m
    tm = _pick_node_tile(n_pad, tm_cap)
    tk = _pick_node_tile(n_pad, tile_k)

    vmem_budget = 40 * 1024 * 1024          # fits v7x 64 MiB physical with headroom
    if tile_feat is None:
        tn = _round_up(d, 128)              # default: whole feature dim -> adj read once
        while _working_set_bytes(tm, tk, tn, op_bytes) > vmem_budget and tn > 128:
            tn = _round_up(tn // 2, 128)
    else:
        tn = tile_feat
    d_pad = _round_up(d, tn)

    # --- parameter transform + graph densification (plain JAX glue) -------------
    ew_types = jax.nn.leaky_relu(edge_weight * alpha, negative_slope=0.01)   # (T, 1)
    ew = ew_types[e_feat - 1, 0].astype(jnp.float32)                         # (E,)

    # Per-dst-node normalization computed in f32 with an O(E) scatter (exact),
    # independently of the bf16 adjacency operand.  Padded rows get norm = 1.
    deg = jnp.zeros((n_pad,), jnp.float32).at[dst].add(ew)
    norm = (1.0 / jnp.maximum(deg, 1.0)).reshape(n_pad, 1)

    # Adjacency scattered directly at padded shape in f32 (duplicate edges
    # accumulate exactly), then cast once to the MXU operand dtype.
    adj_p = (jnp.zeros((n_pad, n_pad), jnp.float32)
             .at[dst, src].add(ew)
             .astype(operand_dtype))
    feat_p = jnp.pad(feat.astype(operand_dtype), ((0, n_pad - n), (0, d_pad - d)))

    grid = (n_pad // tm, d_pad // tn, n_pad // tk)

    cost = pl.CostEstimate(
        flops=2 * n_pad * n_pad * d_pad,
        transcendentals=0,
        bytes_accessed=(n_pad * n_pad * op_bytes * (d_pad // tn)   # adj (re-)streams
                        + n_pad * d_pad * op_bytes * (n_pad // tm) # feat re-streams
                        + n_pad * d_pad * 4                        # f32 output
                        + n_pad * 4 * (d_pad // tn)),              # norm
    )

    out_p = pl.pallas_call(
        _regin_kernel,
        out_shape=jax.ShapeDtypeStruct((n_pad, d_pad), jnp.float32),
        grid_spec=pltpu.PrefetchScalarGridSpec(
            num_scalar_prefetch=0,
            grid=grid,
            in_specs=[
                pl.BlockSpec((tm, tk), lambda i, j, k: (i, k)),   # adjacency tile
                pl.BlockSpec((tk, tn), lambda i, j, k: (k, j)),   # feature tile
                pl.BlockSpec((tm, 1), lambda i, j, k: (i, 0)),    # per-dst norm
            ],
            out_specs=pl.BlockSpec((tm, tn), lambda i, j, k: (i, j)),
        ),
        compiler_params=pltpu.CompilerParams(
            dimension_semantics=("parallel", "parallel", "arbitrary"),
            vmem_limit_bytes=48 * 1024 * 1024,
        ),
        cost_estimate=cost,
    )(adj_p, feat_p, norm)

    return out_p[:n, :d].astype(out_dtype)


def _reference(src, dst, e_feat, feat, edge_weight, alpha):
    ew_types = jax.nn.leaky_relu(edge_weight * alpha, negative_slope=0.01)
    ew = ew_types[e_feat - 1, 0]
    n = feat.shape[0]
    adj = jnp.zeros((n, n), jnp.float32).at[dst, src].add(ew)
    deg = adj.sum(-1, keepdims=True)
    norm = 1.0 / jnp.maximum(deg, 1.0)
    return (adj @ feat) * norm


if __name__ == "__main__":
    key = jax.random.PRNGKey(0)
    keys = jax.random.split(key, 8)

    # Tolerance accounts for bf16 MXU operands (accumulation and normalization
    # are exact f32 now that norm is a wrapper-side scatter).
    TOL = dict(atol=5e-2, rtol=5e-2)

    # ---- test 1: module-sized toy graph (single-tile grid after padding) -----
    N, D, E, T, ALPHA = 16, 32, 48, 4, 10.0
    feat = jax.random.normal(keys[0], (N, D), dtype=jnp.float32)
    src = jax.random.randint(keys[1], (E,), 0, N, dtype=jnp.int32)
    dst = jax.random.randint(keys[2], (E,), 0, N, dtype=jnp.int32)
    e_feat = jax.random.randint(keys[3], (E,), 1, T + 1, dtype=jnp.int32)
    # reset_parameters(): edge_weight = 1.0 / alpha  (deterministic init)
    edge_weight = jnp.full((T, 1), 1.0 / ALPHA, dtype=jnp.float32)
    # TODO(synk): eps / apply_func / activation exist in __init__ but are unused in forward.

    out = jax.block_until_ready(regin_conv(src, dst, e_feat, feat, edge_weight, ALPHA))
    ref = _reference(src, dst, e_feat, feat, edge_weight, ALPHA)
    assert out.shape == ref.shape
    assert jnp.allclose(out, ref, **TOL), float(jnp.max(jnp.abs(out - ref)))

    # ---- test 2: larger graph, automatic tile plan (adj streamed once) --------
    N, D, E, T, ALPHA = 300, 200, 2000, 5, 10.0
    feat = jax.random.normal(keys[4], (N, D), dtype=jnp.float32)
    src = jax.random.randint(keys[5], (E,), 0, N, dtype=jnp.int32)
    dst = jax.random.randint(keys[6], (E,), 0, N, dtype=jnp.int32)
    e_feat = jax.random.randint(keys[7], (E,), 1, T + 1, dtype=jnp.int32)
    # distinct per-type weights (all positive after LeakyReLU, exact in bf16)
    edge_weight = (jnp.arange(1, T + 1, dtype=jnp.float32) / (2.0 * ALPHA)).reshape(T, 1)
    ref = _reference(src, dst, e_feat, feat, edge_weight, ALPHA)

    out = jax.block_until_ready(regin_conv(src, dst, e_feat, feat, edge_weight, ALPHA))
    assert jnp.allclose(out, ref, **TOL), float(jnp.max(jnp.abs(out - ref)))

    # ---- test 3: same graph, forced small tiles -> full (i, j, k) multi-tile grid
    out = jax.block_until_ready(
        regin_conv(src, dst, e_feat, feat, edge_weight, ALPHA,
                   tile_m=128, tile_k=128, tile_feat=128))   # grid (3, 2, 3)
    assert jnp.allclose(out, ref, **TOL), float(jnp.max(jnp.abs(out - ref)))

    print("KERNEL_OK")
</pallas_src>

<mosaic_0001>
module attributes {stable_mosaic.version = 11 : i64} {
  func.func @_regin_kernel(%arg0: i32, %arg1: i32, %arg2: i32, %arg3: memref<128x128xbf16, #tpu.memory_space<vmem>>, %arg4: memref<128x128xbf16, #tpu.memory_space<vmem>>, %arg5: memref<128x1xf32, #tpu.memory_space<vmem>>, %arg6: memref<128x128xf32, #tpu.memory_space<vmem>>) attributes {dimension_semantics = [#tpu.dimension_semantics<parallel>, #tpu.dimension_semantics<parallel>, #tpu.dimension_semantics<arbitrary>], iteration_bounds = array<i64: 1, 1, 1>, scalar_prefetch = 0 : i64, scratch_operands = 0 : i64, tpu.core_type = #tpu.core_type<tc>, window_params = [{transform_indices = @transform_0, window_bounds = array<i64: 128, 128>}, {transform_indices = @transform_1, window_bounds = array<i64: 128, 128>}, {transform_indices = @transform_2, window_bounds = array<i64: 128, 1>}, {transform_indices = @transform_3, window_bounds = array<i64: 128, 128>}]} {
    %c0_i32 = arith.constant 0 : i32
    %0 = arith.cmpi eq, %arg2, %c0_i32 : i32
    %1 = arith.extui %0 : i1 to i32
    %c0_i32_0 = arith.constant 0 : i32
    %2 = arith.cmpi ne, %1, %c0_i32_0 : i32
    scf.if %2 {
      %cst_10 = arith.constant 0.000000e+00 : f32
      %12 = vector.broadcast %cst_10 : f32 to vector<128x128xf32>
      %c0_11 = arith.constant 0 : index
      %c0_12 = arith.constant 0 : index
      %13 = vector.load %arg6[%c0_11, %c0_12] : memref<128x128xf32, #tpu.memory_space<vmem>>, vector<128x128xf32>
      tpu.vector_store %arg6[%c0_11, %c0_12], %12 {strides = array<i32>} : memref<128x128xf32, #tpu.memory_space<vmem>>, vector<128x128xf32>,
    } else {
    }
    %c0 = arith.constant 0 : index
    %c0_1 = arith.constant 0 : index
    %3 = vector.load %arg6[%c0, %c0_1] : memref<128x128xf32, #tpu.memory_space<vmem>>, vector<128x128xf32>
    %c0_2 = arith.constant 0 : index
    %c0_3 = arith.constant 0 : index
    %4 = vector.load %arg3[%c0_2, %c0_3] : memref<128x128xbf16, #tpu.memory_space<vmem>>, vector<128x128xbf16>
    %c0_4 = arith.constant 0 : index
    %c0_5 = arith.constant 0 : index
    %5 = vector.load %arg4[%c0_4, %c0_5] : memref<128x128xbf16, #tpu.memory_space<vmem>>, vector<128x128xbf16>
    %cst = arith.constant dense<0.000000e+00> : vector<128x128xf32>
    %6 = tpu.matmul %4, %5, %cst {dimension_numbers = #tpu.dot_dimension_numbers<[1], [0], [0], [1], [0, 0, 1, 1], [], []>} : vector<128x128xbf16>, vector<128x128xbf16>, vector<128x128xf32> -> vector<128x128xf32>
    %7 = arith.addf %3, %6 : vector<128x128xf32>
    %c0_6 = arith.constant 0 : index
    %c0_7 = arith.constant 0 : index
    %8 = vector.load %arg6[%c0_6, %c0_7] : memref<128x128xf32, #tpu.memory_space<vmem>>, vector<128x128xf32>
    tpu.vector_store %arg6[%c0_6, %c0_7], %7 {strides = array<i32>} : memref<128x128xf32, #tpu.memory_space<vmem>>, vector<128x128xf32>,
    %c0_i32_8 = arith.constant 0 : i32
    %9 = arith.cmpi eq, %arg2, %c0_i32_8 : i32
    %10 = arith.extui %9 : i1 to i32
    %c0_i32_9 = arith.constant 0 : i32
    %11 = arith.cmpi ne, %10, %c0_i32_9 : i32
    scf.if %11 {
      %c0_10 = arith.constant 0 : index
      %c0_11 = arith.constant 0 : index
      %12 = vector.load %arg6[%c0_10, %c0_11] : memref<128x128xf32, #tpu.memory_space<vmem>>, vector<128x128xf32>
      %c0_12 = arith.constant 0 : index
      %c0_13 = arith.constant 0 : index
      %13 = vector.load %arg5[%c0_12, %c0_13] : memref<128x1xf32, #tpu.memory_space<vmem>>, vector<128x1xf32>
      %14 = vector.broadcast %13 : vector<128x1xf32> to vector<128x128xf32>
      %15 = arith.mulf %12, %14 : vector<128x128xf32>
      %c0_14 = arith.constant 0 : index
      %c0_15 = arith.constant 0 : index
      %16 = vector.load %arg6[%c0_14, %c0_15] : memref<128x128xf32, #tpu.memory_space<vmem>>, vector<128x128xf32>
      tpu.vector_store %arg6[%c0_14, %c0_15], %15 {strides = array<i32>} : memref<128x128xf32, #tpu.memory_space<vmem>>, vector<128x128xf32>,
    } else {
    }
    return
  }
  func.func @transform_0(%arg0: i32, %arg1: i32, %arg2: i32) -> (i32, i32) {
    %c0_i32 = arith.constant 0 : i32
    return %arg0, %arg2 : i32, i32
  }
  func.func @transform_1(%arg0: i32, %arg1: i32, %arg2: i32) -> (i32, i32) {
    %c0_i32 = arith.constant 0 : i32
    return %arg2, %arg1 : i32, i32
  }
  func.func @transform_2(%arg0: i32, %arg1: i32, %arg2: i32) -> (i32, i32) {
    %c0_i32 = arith.constant 0 : i32
    %c0_i32_0 = arith.constant 0 : i32
    return %arg0, %c0_i32 : i32, i32
  }
  func.func @transform_3(%arg0: i32, %arg1: i32, %arg2: i32) -> (i32, i32) {
    %c0_i32 = arith.constant 0 : i32
    return %arg0, %arg1 : i32, i32
  }
}

</mosaic_0001>

<bundles_post_ra>
// kernel: tpu_custom_call.1
= control target key start
LH: loop header
LB: loop body
LE: loop exit
PB: predicated region body
PF: predicated region fallthrough
CT: control target
= control target key end

     0   :  { %v599_v2 = vmov 0   ;;  %s731_s0 = inlined_call_operand.vmem [shape: bf16[128,128], index: 0, kind: input, shape index: {}]   ;;  %s732_s1 = inlined_call_operand.vmem [shape: bf16[128,128], index: 1, kind: input, shape index: {}]   ;;  %s733_s2 = inlined_call_operand.vmem [shape: f32[128,1], index: 2, kind: input, shape index: {}]   ;;  %s734_s3 = inlined_call_operand.hbm [shape: f32[128,128], index: 3, kind: output, shape index: {}]  }
   0x1   :  { %v559_v0 = vld [vmem:[%s732_s1] sm:$0xff]   ;;  %v560_v1 = vld [vmem:[%s732_s1 + $0x8] sm:$0xff]   ;;  %558 = vset.pattern.permute.xlu1 %v599_v2  ;;  %557 = vset.pattern.permute.xlu0 %v599_v2  ;;  %v561_v3 = vld [vmem:[%s732_s1 + $0x10] sm:$0xff]  }
   0x2   :  { %504 = vmatprep.subr.bf16.mxu0 %v559_v0  ;;  %536 = vmatprep.subr.bf16.mxu1 %v559_v0  ;;  %v562_v4 = vld [vmem:[%s732_s1 + $0x18] sm:$0xff]   ;;  %v567_v5 = vld [vmem:[%s731_s0] sm:$0xff]   ;;  %v564_v8 = vld [vmem:[%s732_s1 + $0x28] sm:$0xff]  }
   0x3   :  { %505 = vmatpush3.bf16.msra.mxu0 %v559_v0  ;;  %544 = vmatpush3.bf16.msra.mxu1 %v559_v0  ;;  %v568_v6 = vld [vmem:[%s731_s0 + $0x20] sm:$0xff]   ;;  %v330_v9 = vld [vmem:[%s733_s2 + $0x10] sm:$0xff]  ;;  %v331_v11 = vld [vmem:[%s733_s2 + $0x18] sm:$0xff] }
   0x4   :  { %506 = vmatprep.subr.bf16.mxu0 %v560_v1  ;;  %537 = vmatprep.subr.bf16.mxu1 %v560_v1  ;;  %v563_v7 = vld [vmem:[%s732_s1 + $0x20] sm:$0xff]   ;;  %v329_v12 = vld [vmem:[%s733_s2 + $0x8] sm:$0xff]  ;;  %v565_v13 = vld [vmem:[%s732_s1 + $0x30] sm:$0xff]  }
   0x5   :  { %520 = vmatprep.mubr.bf16.mxu0 %v567_v5  ;;  %528 = vmatprep.mubr.bf16.mxu1 %v568_v6  ;;  %v328_v10 = vld [vmem:[%s733_s2] sm:$0xff] }
   0x6   :  { %356 = vperm.xlu1 %558, %v330_v9   ;;  %346 = vperm.xlu0 %557, %v328_v10  }
   0x7   :  { %507 = vmatpush3.bf16.msra.mxu0 %v560_v1  ;;  %545 = vmatpush3.bf16.msra.mxu1 %v560_v1 }
   0x8   :  { %508 = vmatprep.subr.bf16.mxu0 %v561_v3  ;;  %538 = vmatprep.subr.bf16.mxu1 %v561_v3 }
   0xa   :  { %361 = vperm.xlu1 %558, %v331_v11   ;;  %351 = vperm.xlu0 %557, %v329_v12  }
   0xb   :  { %509 = vmatpush3.bf16.msra.mxu0 %v561_v3  ;;  %546 = vmatpush3.bf16.msra.mxu1 %v561_v3 }
   0xc   :  { %510 = vmatprep.subr.bf16.mxu0 %v562_v4  ;;  %539 = vmatprep.subr.bf16.mxu1 %v562_v4 }
   0xf   :  { %511 = vmatpush3.bf16.msra.mxu0 %v562_v4  ;;  %547 = vmatpush3.bf16.msra.mxu1 %v562_v4 }
  0x10   :  { %512 = vmatprep.subr.bf16.mxu0 %v563_v7  ;;  %540 = vmatprep.subr.bf16.mxu1 %v563_v7 }
  0x13   :  { %513 = vmatpush3.bf16.msra.mxu0 %v563_v7  ;;  %548 = vmatpush3.bf16.msra.mxu1 %v563_v7 }
  0x14   :  { %514 = vmatprep.subr.bf16.mxu0 %v564_v8  ;;  %541 = vmatprep.subr.bf16.mxu1 %v564_v8 }
  0x15   :  { %8 = vsyncpa [#allocation3], 0  ;;  %v333_v14 = vld [vmem:[%s733_s2 + $0x28] sm:$0xff]  ;;  %v332_v15 = vld [vmem:[%s733_s2 + $0x20] sm:$0xff] }
  0x16   :  { %v566_v16 = vld [vmem:[%s732_s1 + $0x38] sm:$0xff]   ;;  %371 = vperm.xlu1 %558, %v333_v14   ;;  %366 = vperm.xlu0 %557, %v332_v15   ;;  %v334_v18 = vld [vmem:[%s733_s2 + $0x30] sm:$0xff]  ;;  %v569_v19 = vld [vmem:[%s731_s0 + $0x8] sm:$0xff]  }
  0x17   :  { %515 = vmatpush3.bf16.msra.mxu0 %v564_v8  ;;  %549 = vmatpush3.bf16.msra.mxu1 %v564_v8  ;;  %v335_v17 = vld [vmem:[%s733_s2 + $0x38] sm:$0xff]  ;;  %v570_v20 = vld [vmem:[%s731_s0 + $0x28] sm:$0xff]   ;;  %v336_v22 = vld [vmem:[%s733_s2 + $0x40] sm:$0xff] }
  0x18   :  { %516 = vmatprep.subr.bf16.mxu0 %v565_v13  ;;  %542 = vmatprep.subr.bf16.mxu1 %v565_v13  ;;  %v337_v21 = vld [vmem:[%s733_s2 + $0x48] sm:$0xff]  ;;  %v571_v23 = vld [vmem:[%s731_s0 + $0x10] sm:$0xff]   ;;  %v339_v25 = vld [vmem:[%s733_s2 + $0x58] sm:$0xff] }
  0x19   :  { %v572_v24 = vld [vmem:[%s731_s0 + $0x30] sm:$0xff]   ;;  %v573_v27 = vld [vmem:[%s731_s0 + $0x18] sm:$0xff]   ;;  %v341_v29 = vld [vmem:[%s733_s2 + $0x68] sm:$0xff] }
  0x1a   :  { %381 = vperm.xlu1 %558, %v335_v17   ;;  %376 = vperm.xlu0 %557, %v334_v18   ;;  %v338_v26 = vld [vmem:[%s733_s2 + $0x50] sm:$0xff]  ;;  %v574_v28 = vld [vmem:[%s731_s0 + $0x38] sm:$0xff]   ;;  %v340_v30 = vld [vmem:[%s733_s2 + $0x60] sm:$0xff]  ;;  %s600_s0 = smov [#allocation2]  }
  0x1b   :  { %517 = vmatpush3.bf16.msra.mxu0 %v565_v13  ;;  %550 = vmatpush3.bf16.msra.mxu1 %v565_v13  ;;  %v343_v31 = vld [vmem:[%s733_s2 + $0x78] sm:$0xff]  ;;  %v342_v32 = vld [vmem:[%s733_s2 + $0x70] sm:$0xff]  ;;  %s461_s2 = sshll.u32 %s600_s0, 4  ;;  %s462_s2 = int_to_ptr.vmem [resolvable:$true] %s461_s2 }
  0x1c   :  { %518 = vmatprep.subr.bf16.mxu0 %v566_v16  ;;  %543 = vmatprep.subr.bf16.mxu1 %v566_v16  ;;  %s575_s21 = scalar_lea.vmem %s462_s2, 2048  ;;  %p580_p1 = scmp.lt.s32.totalorder %s462_s2, %s462_s2 }
  0x1d   :  { %p576_p0 = scmp.ne.s32.totalorder %s462_s2, %s575_s21  ;;  %p581_p2 = scmp.lt.s32.totalorder %s575_s21, %s575_s21 }
  0x1e   :  { %391 = vperm.xlu1 %558, %v337_v21   ;;  %386 = vperm.xlu0 %557, %v336_v22  }
  0x1f   :  { %519 = vmatpush3.bf16.msra.mxu0 %v566_v16  ;;  %551 = vmatpush3.bf16.msra.mxu1 %v566_v16  ;;  %p582_p3 = por %p581_p2, %p580_p1 }
  0x21   :  { %p583_p4 = pnand %p582_p3, %p576_p0 }
  0x22   :  { %521 = vmatmul.mubr.bf16.vlgmr.msra.gmra.mrb[0].mxu0 %v569_v19  ;;  %529 = vmatmul.mubr.bf16.vlgmr.msra.gmra.mrb[0].mxu1 %v570_v20 }
  0x23   :  { %524 = vmatprep.mubr.bf16.mxu0 %v571_v23  ;;  %532 = vmatprep.mubr.bf16.mxu1 %v572_v24 }
  0x24   :  { %401 = vperm.xlu1 %558, %v339_v25   ;;  %396 = vperm.xlu0 %557, %v338_v26  }
  0x28   :  { %411 = vperm.xlu1 %558, %v341_v29   ;;  %406 = vperm.xlu0 %557, %v340_v30  }
  0x2a   :  { %525 = vmatmul.mubr.bf16.gmra.mrb[4].mxu0 %v573_v27  ;;  %533 = vmatmul.mubr.bf16.gmra.mrb[4].mxu1 %v574_v28 }
  0x2c   :  { %421 = vperm.xlu1 %558, %v343_v31   ;;  %416 = vperm.xlu0 %557, %v342_v32  }
  0x85   :  { %v347_v33 = vpop.permute.xlu0 %346  ;;  %v357_v34 = vpop.permute.xlu1 %356 }
  0x89   :  { %v352_v35 = vpop.permute.xlu0 %351  ;;  %v362_v36 = vpop.permute.xlu1 %361 }
  0x95   :  { %v367_v37 = vpop.permute.xlu0 %366  ;;  %v372_v38 = vpop.permute.xlu1 %371 }
  0x99   :  { %v377_v39 = vpop.permute.xlu0 %376  ;;  %v382_v40 = vpop.permute.xlu1 %381 }
  0x9d   :  { %v387_v41 = vpop.permute.xlu0 %386  ;;  %v392_v42 = vpop.permute.xlu1 %391 }
  0xa3   :  { %v397_v43 = vpop.permute.xlu0 %396  ;;  %v402_v44 = vpop.permute.xlu1 %401 }
  0xa7   :  { %v407_v45 = vpop.permute.xlu0 %406  ;;  %v412_v60 = vpop.permute.xlu1 %411 }
  0xab   :  { %v417_v63 = vpop.permute.xlu0 %416  ;;  %v422_v10 = vpop.permute.xlu1 %421 }
  0xf5   :  { %v522_v46 = vpop.f32.mrb[0].mxu0  ;;  %v530_v47 = vpop.f32.mrb[0].mxu1 }
  0xf6   :  { %v214_v48 = vpop.f32.mrb[1].mxu0  ;;  %v246_v49 = vpop.f32.mrb[1].mxu1  ;;  %v426_v52 = vmul.f32 %v522_v46, %v357_v34  ;;  %v434_v53 = vmul.f32 %v530_v47, %v397_v43 }
  0xf7   :  { %v523_v50 = vpop.f32.mrb[2].mxu0  ;;  %v531_v51 = vpop.f32.mrb[2].mxu1  ;;  %v424_v56 = vmul.f32 %v347_v33, %v214_v48  ;;  %v432_v57 = vmul.f32 %v387_v41, %v246_v49 }
  0xf8   :  { %v217_v54 = vpop.f32.mrb[3].mxu0  ;;  %v249_v55 = vpop.f32.mrb[3].mxu1  ;;  %442 = vst [vmem:[#allocation2 + $0x10] sm:$0xff] %v426_v52  ;;  %450 = vst [vmem:[#allocation2 + $0x50] sm:$0xff] %v434_v53  ;;  %v427_v58 = vmul.f32 %v523_v50, %v362_v36  ;;  %v435_v59 = vmul.f32 %v531_v51, %v402_v44 }
  0xf9   :  { %440 = vst [vmem:[#allocation2] sm:$0xff] %v424_v56  ;;  %448 = vst [vmem:[#allocation2 + $0x40] sm:$0xff] %v432_v57  ;;  %v425_v61 = vmul.f32 %v352_v35, %v217_v54  ;;  %v433_v62 = vmul.f32 %v392_v42, %v249_v55 }
  0xfa   :  { %443 = vst [vmem:[#allocation2 + $0x18] sm:$0xff] %v427_v58  ;;  %451 = vst [vmem:[#allocation2 + $0x58] sm:$0xff] %v435_v59 }
  0xfb   :  { %441 = vst [vmem:[#allocation2 + $0x8] sm:$0xff] %v425_v61  ;;  %449 = vst [vmem:[#allocation2 + $0x48] sm:$0xff] %v433_v62 }
  0xfd   :  { %v526_v0 = vpop.f32.mrb[4].mxu0  ;;  %v534_v1 = vpop.f32.mrb[4].mxu1 }
  0xfe   :  { %v230_v2 = vpop.f32.mrb[5].mxu0  ;;  %v262_v3 = vpop.f32.mrb[5].mxu1  ;;  %v430_v6 = vmul.f32 %v526_v0, %v377_v39  ;;  %v438_v7 = vmul.f32 %v534_v1, %v417_v63 }
  0xff   :  { %v527_v4 = vpop.f32.mrb[6].mxu0  ;;  %v535_v5 = vpop.f32.mrb[6].mxu1  ;;  %v428_v11 = vmul.f32 %v367_v37, %v230_v2  ;;  %v436_v12 = vmul.f32 %v407_v45, %v262_v3 }
 0x100   :  { %v233_v8 = vpop.f32.mrb[7].mxu0  ;;  %v265_v9 = vpop.f32.mrb[7].mxu1  ;;  %446 = vst [vmem:[#allocation2 + $0x30] sm:$0xff] %v430_v6  ;;  %454 = vst [vmem:[#allocation2 + $0x70] sm:$0xff] %v438_v7  ;;  %v431_v13 = vmul.f32 %v527_v4, %v382_v40  ;;  %v439_v14 = vmul.f32 %v535_v5, %v422_v10 }
 0x101   :  { %444 = vst [vmem:[#allocation2 + $0x20] sm:$0xff] %v428_v11  ;;  %452 = vst [vmem:[#allocation2 + $0x60] sm:$0xff] %v436_v12  ;;  %v429_v15 = vmul.f32 %v372_v38, %v233_v8  ;;  %v437_v16 = vmul.f32 %v412_v60, %v265_v9 }
 0x102   :  { %447 = vst [vmem:[#allocation2 + $0x38] sm:$0xff] %v431_v13  ;;  %455 = vst [vmem:[#allocation2 + $0x78] sm:$0xff] %v439_v14 }
 0x103   :  { %445 = vst [vmem:[#allocation2 + $0x28] sm:$0xff] %v429_v15  ;;  %453 = vst [vmem:[#allocation2 + $0x68] sm:$0xff] %v437_v16 }
 0x104   :  { %586 = shalt.err (!%p583_p4)
}
 0x105   :  { %s587_s23 = scalar_lea.hbm %s734_s3, 2048 }
 0x106   :  { %p588_p5 = scmp.ne.s32.totalorder %s734_s3, %s587_s23  ;;  %p591_p6 = scmp.lt.u32.totalorder %s587_s23, %s734_s3 }
 0x108   :  { %p593_p7 = pnand %p591_p6, %p588_p5 }
 0x10a   :  { %596 = shalt.err (!%p593_p7)
}
 0x10b   :  { %s601_s28 = smov 128   ;;  %s602_s29 = smov 8  }
 0x10c   :  { %467 = dma.vmem_to_hbm [thread:$0]  %s462_s2, 2048, %s734_s3, [#allocation3], %s601_s28, %s601_s28, %s602_s29  }
 0x10d   :  { %597 = dma.done.wait [#allocation3], 2048  }
 0x10e   :  { %598 = vsyncadd [#allocation3], 4294965248 }
 0x10f   :  { %471 = vsyncpa [#allocation3], 1 }

</bundles_post_ra>
